<compile_context>
chip_gen: v6e
topology: v6e:2x2x1
jax: 0.10.0
libtpu: 0.0.40
codegen_flags: <defaults>
</compile_context>

<pallas_src>
import functools

import jax
import jax.numpy as jnp
from jax.experimental import pallas as pl
from jax.experimental.pallas import tpu as pltpu


def _round_up(v, m):
    return ((v + m - 1) // m) * m


def _pick_row_tile(H, W):
    """Smallest divisor HT of H giving >=128 sublane-friendly output rows per
    tile (HT*W); falls back to the whole sample when H*W is tiny."""
    for ht in range(1, H + 1):
        if H % ht == 0 and ht * W >= 128 and (ht * W) % 8 == 0:
            return ht
    return H


# ----------------------------------------------------------------------------
# Fused kernel: LeakyReLU + phase/tap-fused transposed conv + folded BN bias.
# ----------------------------------------------------------------------------
def _decoder_kernel(x_ref, w_ref, b_ref, o_ref, *, HT, W, C):
    # x_ref: (1, HT+2, W+2, C)  bf16  zero-padded NHWC row tile (2-row halo)
    # w_ref: (9*C, NPACK)       bf16  tap+phase fused weights (BN folded)
    # b_ref: (1, NPACK)         f32   conv bias + BN shift, packed per lane
    # o_ref: (1, HT*W, NPACK)   bf16  lane = (ph*2 + pw)*ch_out + co
    xa = x_ref[0]                                   # (HT+2, W+2, C)
    # LeakyReLU(0.2) applied ONCE to the slab (leaky(0) == 0 keeps pad exact).
    xa = jnp.where(xa >= 0, xa, xa * 0.2)

    # im2col into ONE (HT*W, 9C) patch: column block (r*3+c)*C holds the
    # input channels of 3x3-window offset (r, c).
    cols = [xa[r:r + HT, c:c + W, :].reshape(HT * W, C)
            for r in range(3) for c in range(3)]
    patch = jnp.concatenate(cols, axis=-1)          # (HT*W, 9C) bf16

    # Single MXU matmul: all 4 sub-pixel phases live in the output lanes.
    acc = jnp.dot(patch, w_ref[...], preferred_element_type=jnp.float32)
    o_ref[0] = (acc + b_ref[...]).astype(o_ref.dtype)


# ----------------------------------------------------------------------------
# Host-side parameter preparation (BN fold, phase/tap fusion, lane packing).
# ----------------------------------------------------------------------------
def init_raw_params(key, ch_in, ch_out, w_bn=True):
    """PyTorch-layout parameters: ConvTranspose2d weight (Cin, Cout, 4, 4)."""
    k1, k2, k3, k4, k5, k6 = jax.random.split(key, 6)
    w = 0.05 * jax.random.normal(k1, (ch_in, ch_out, 4, 4), jnp.float32)
    b = 0.05 * jax.random.normal(k2, (ch_out,), jnp.float32)
    bn = None
    if w_bn:
        gamma = 1.0 + 0.1 * jax.random.normal(k3, (ch_out,), jnp.float32)
        beta = 0.1 * jax.random.normal(k4, (ch_out,), jnp.float32)
        rm = 0.1 * jax.random.normal(k5, (ch_out,), jnp.float32)
        rv = jax.random.uniform(k6, (ch_out,), jnp.float32,
                                minval=0.5, maxval=1.5)
        bn = (gamma, beta, rm, rv)
    return {"weight": w, "bias": b, "bn": bn}


def build_kernel_params(raw):
    """Fold BN + conv bias and fuse taps/phases into one (9C, NPACK) bf16
    weight (block-sparse over phases) and one packed f32 bias row."""
    w, b, bn = raw["weight"], raw["bias"], raw["bn"]     # w: (Cin, Cout, 4, 4)
    ch_in, ch_out = w.shape[0], w.shape[1]
    if bn is not None:
        gamma, beta, rm, rv = bn
        s = gamma * jax.lax.rsqrt(rv + 1e-5)
        shift = (b - rm) * s + beta
    else:
        s = jnp.ones((ch_out,), jnp.float32)
        shift = b

    K = 9 * ch_in
    npack = _round_up(4 * ch_out, 128)

    # out[2m+ph, 2n+pw, co] = sum_{dh,dw,ci} xpad[m+ph+dh, n+pw+dw, ci]
    #                                         * W[ci, co, 3-ph-2dh, 3-pw-2dw]
    # Row    index of wf: (r*3 + c)*Cin + ci   with (r, c) = (ph+dh, pw+dw)
    # Column index of wf: (ph*2 + pw)*Cout + co     (block-sparse elsewhere)
    wf = jnp.zeros((K, 4 * ch_out), jnp.float32)
    for ph in range(2):
        for pw in range(2):
            col0 = (ph * 2 + pw) * ch_out
            for dh in range(2):
                for dw in range(2):
                    r, c = ph + dh, pw + dw
                    kh, kw = 3 - ph - 2 * dh, 3 - pw - 2 * dw
                    row0 = (r * 3 + c) * ch_in
                    blk = w[:, :, kh, kw] * s[None, :]       # (Cin, Cout)
                    wf = wf.at[row0:row0 + ch_in,
                               col0:col0 + ch_out].set(blk)
    wf = jnp.pad(wf, ((0, 0), (0, npack - 4 * ch_out))).astype(jnp.bfloat16)

    bias = jnp.pad(jnp.tile(shift, 4), (0, npack - 4 * ch_out))
    bias = bias.reshape(1, npack).astype(jnp.float32)
    return {"w_fused": wf, "bias": bias}


# ----------------------------------------------------------------------------
# Forward wrapper (NCHW in / NCHW out, matching the PyTorch module).
# ----------------------------------------------------------------------------
@functools.partial(jax.jit, static_argnames=("ch_out",))
def rec_net_decoder_part_forward(params, x, *, ch_out):
    """x: (B, ch_in, H, W) f32 -> (B, ch_out, 2H, 2W) f32."""
    w_fused, bias_row = params["w_fused"], params["bias"]
    B, C, H, W = x.shape
    K, NPACK = w_fused.shape

    HT = _pick_row_tile(H, W)
    nh = H // HT
    MT = HT * W
    G = B * nh

    # NHWC + 1-pixel zero pad (structural border of ConvTranspose2d(4,2,1));
    # LeakyReLU happens inside the kernel (leaky(0)==0 keeps the pad exact).
    xp = jnp.pad(jnp.transpose(x, (0, 2, 3, 1)),
                 ((0, 0), (1, 1), (1, 1), (0, 0))).astype(jnp.bfloat16)
    # Host-side halo replication into overlapping row tiles: (G, HT+2, W+2, C)
    idx = (jnp.arange(nh) * HT)[:, None] + jnp.arange(HT + 2)[None, :]
    xt = jnp.take(xp, idx, axis=1).reshape(G, HT + 2, W + 2, C)

    flops = 2 * G * MT * K * NPACK
    bytes_accessed = (xt.size * 2 + w_fused.size * 2 + bias_row.size * 4
                      + G * MT * NPACK * 2)

    # Explicit VMEM budget: double-buffered in/out blocks + weights + scratch.
    blk_in = (HT + 2) * (W + 2) * C * 2
    blk_out = MT * NPACK * 2
    w_bytes = K * NPACK * 2 + NPACK * 4
    live = MT * K * 2 + MT * NPACK * 4          # patch + f32 accumulator
    vmem_limit = int(min(64 * 2 ** 20,
                         max(8 * 2 ** 20,
                             4 * (blk_in + blk_out + w_bytes) + 2 * live
                             + (4 << 20))))

    y = pl.pallas_call(
        functools.partial(_decoder_kernel, HT=HT, W=W, C=C),
        out_shape=jax.ShapeDtypeStruct((G, MT, NPACK), jnp.bfloat16),
        grid=(G,),
        in_specs=[
            pl.BlockSpec((1, HT + 2, W + 2, C), lambda g: (g, 0, 0, 0)),
            pl.BlockSpec((K, NPACK), lambda g: (0, 0)),
            pl.BlockSpec((1, NPACK), lambda g: (0, 0)),
        ],
        out_specs=pl.BlockSpec((1, MT, NPACK), lambda g: (g, 0, 0)),
        compiler_params=pltpu.CompilerParams(
            dimension_semantics=("parallel",),
            vmem_limit_bytes=vmem_limit),
        cost_estimate=pl.CostEstimate(flops=flops, transcendentals=0,
                                      bytes_accessed=bytes_accessed),
    )(xt, w_fused, bias_row)

    # Un-pack lanes ((ph*2+pw)*ch_out + co), interleave the 2x2 phases into
    # (2H, 2W) and cast back to f32.
    y = y.reshape(B, H * W, NPACK)[..., :4 * ch_out].astype(jnp.float32)
    y = y.reshape(B, H, W, 2, 2, ch_out)                 # (B, m, n, ph, pw, co)
    out = jnp.transpose(y, (0, 5, 1, 3, 2, 4)).reshape(B, ch_out, 2 * H, 2 * W)
    # TODO(synk): Dropout(0.5) is eval-mode (identity) here.
    return out


# ----------------------------------------------------------------------------
# Pure-JAX reference (definition-level transposed conv) for validation.
# ----------------------------------------------------------------------------
def reference_forward(raw, x):
    w, b, bn = raw["weight"], raw["bias"], raw["bn"]
    B, C, H, W = x.shape
    ch_out = w.shape[1]
    a = jnp.where(x >= 0, x, 0.2 * x)
    out = jnp.zeros((B, ch_out, 2 * H + 2, 2 * W + 2), jnp.float32)
    for kh in range(4):
        for kw in range(4):
            contrib = jnp.einsum("bchw,cn->bnhw", a, w[:, :, kh, kw])
            out = out.at[:, :, kh:kh + 2 * H:2, kw:kw + 2 * W:2].add(contrib)
    out = out[:, :, 1:1 + 2 * H, 1:1 + 2 * W] + b[None, :, None, None]
    if bn is not None:
        gamma, beta, rm, rv = bn
        s = gamma * jax.lax.rsqrt(rv + 1e-5)
        out = ((out - rm[None, :, None, None]) * s[None, :, None, None]
               + beta[None, :, None, None])
    return out


if __name__ == "__main__":
    key = jax.random.PRNGKey(0)
    kx, kp = jax.random.split(key)
    B, CH_IN, CH_OUT, H, W = 2, 8, 4, 16, 16

    x = jax.random.uniform(kx, (B, CH_IN, H, W), jnp.float32,
                           minval=-1.0, maxval=1.0)
    raw = init_raw_params(kp, CH_IN, CH_OUT, w_bn=True)
    params = build_kernel_params(raw)

    out = rec_net_decoder_part_forward(params, x, ch_out=CH_OUT)
    jax.block_until_ready(out)

    assert out.shape == (B, CH_OUT, 2 * H, 2 * W)
    assert bool(jnp.all(jnp.isfinite(out)))

    ref = reference_forward(raw, x)
    max_err = float(jnp.max(jnp.abs(out - ref)))
    # bf16 inputs/weights/output store vs f32 reference.
    assert max_err < 4e-2, f"max abs err vs reference: {max_err}"
    print("KERNEL_OK")
</pallas_src>

<mosaic_0001>
module attributes {stable_mosaic.version = 11 : i64} {
  func.func @_decoder_kernel(%arg0: i32, %arg1: memref<1x10x18x8xbf16, #tpu.memory_space<vmem>>, %arg2: memref<72x128xbf16, #tpu.memory_space<vmem>>, %arg3: memref<1x128xf32, #tpu.memory_space<vmem>>, %arg4: memref<1x128x128xbf16, #tpu.memory_space<vmem>>) attributes {dimension_semantics = [#tpu.dimension_semantics<parallel>], iteration_bounds = array<i64: 4>, scalar_prefetch = 0 : i64, scratch_operands = 0 : i64, tpu.core_type = #tpu.core_type<tc>, window_params = [{transform_indices = @transform_0, window_bounds = array<i64: 1, 10, 18, 8>}, {pipeline_mode = #tpu.pipeline_mode<synchronous>, transform_indices = @transform_1, window_bounds = array<i64: 72, 128>}, {pipeline_mode = #tpu.pipeline_mode<synchronous>, transform_indices = @transform_2, window_bounds = array<i64: 1, 128>}, {transform_indices = @transform_3, window_bounds = array<i64: 1, 128, 128>}]} {
    %c0 = arith.constant 0 : index
    %c0_0 = arith.constant 0 : index
    %c0_1 = arith.constant 0 : index
    %c0_2 = arith.constant 0 : index
    %0 = vector.load %arg1[%c0, %c0_0, %c0_1, %c0_2] : memref<1x10x18x8xbf16, #tpu.memory_space<vmem>>, vector<1x10x18x8xbf16>
    %1 = vector.shape_cast %0 : vector<1x10x18x8xbf16> to vector<10x18x8xbf16>
    %cst = arith.constant 0.000000e+00 : bf16
    %2 = vector.broadcast %cst : bf16 to vector<10x18x8xbf16>
    %3 = arith.cmpf oge, %1, %2 : vector<10x18x8xbf16>
    %cst_3 = arith.constant 2.001950e-01 : bf16
    %4 = vector.broadcast %cst_3 : bf16 to vector<10x18x8xbf16>
    %5 = arith.mulf %1, %4 : vector<10x18x8xbf16>
    %6 = arith.select %3, %1, %5 : vector<10x18x8xi1>, vector<10x18x8xbf16>
    %7 = vector.extract_strided_slice %6 {offsets = [0, 0, 0], sizes = [8, 16, 8], strides = [1, 1, 1]} : vector<10x18x8xbf16> to vector<8x16x8xbf16>
    %8 = vector.shape_cast %7 : vector<8x16x8xbf16> to vector<128x8xbf16>
    %9 = vector.extract_strided_slice %6 {offsets = [0, 1, 0], sizes = [8, 16, 8], strides = [1, 1, 1]} : vector<10x18x8xbf16> to vector<8x16x8xbf16>
    %10 = vector.shape_cast %9 : vector<8x16x8xbf16> to vector<128x8xbf16>
    %11 = vector.extract_strided_slice %6 {offsets = [0, 2, 0], sizes = [8, 16, 8], strides = [1, 1, 1]} : vector<10x18x8xbf16> to vector<8x16x8xbf16>
    %12 = vector.shape_cast %11 : vector<8x16x8xbf16> to vector<128x8xbf16>
    %13 = vector.extract_strided_slice %6 {offsets = [1, 0, 0], sizes = [8, 16, 8], strides = [1, 1, 1]} : vector<10x18x8xbf16> to vector<8x16x8xbf16>
    %14 = vector.shape_cast %13 : vector<8x16x8xbf16> to vector<128x8xbf16>
    %15 = vector.extract_strided_slice %6 {offsets = [1, 1, 0], sizes = [8, 16, 8], strides = [1, 1, 1]} : vector<10x18x8xbf16> to vector<8x16x8xbf16>
    %16 = vector.shape_cast %15 : vector<8x16x8xbf16> to vector<128x8xbf16>
    %17 = vector.extract_strided_slice %6 {offsets = [1, 2, 0], sizes = [8, 16, 8], strides = [1, 1, 1]} : vector<10x18x8xbf16> to vector<8x16x8xbf16>
    %18 = vector.shape_cast %17 : vector<8x16x8xbf16> to vector<128x8xbf16>
    %19 = vector.extract_strided_slice %6 {offsets = [2, 0, 0], sizes = [8, 16, 8], strides = [1, 1, 1]} : vector<10x18x8xbf16> to vector<8x16x8xbf16>
    %20 = vector.shape_cast %19 : vector<8x16x8xbf16> to vector<128x8xbf16>
    %21 = vector.extract_strided_slice %6 {offsets = [2, 1, 0], sizes = [8, 16, 8], strides = [1, 1, 1]} : vector<10x18x8xbf16> to vector<8x16x8xbf16>
    %22 = vector.shape_cast %21 : vector<8x16x8xbf16> to vector<128x8xbf16>
    %23 = vector.extract_strided_slice %6 {offsets = [2, 2, 0], sizes = [8, 16, 8], strides = [1, 1, 1]} : vector<10x18x8xbf16> to vector<8x16x8xbf16>
    %24 = vector.shape_cast %23 : vector<8x16x8xbf16> to vector<128x8xbf16>
    %25 = tpu.concatenate %8, %10, %12, %14, %16, %18, %20, %22, %24 in 1 : vector<128x8xbf16>, vector<128x8xbf16>, vector<128x8xbf16>, vector<128x8xbf16>, vector<128x8xbf16>, vector<128x8xbf16>, vector<128x8xbf16>, vector<128x8xbf16>, vector<128x8xbf16> -> vector<128x72xbf16>
    %c0_4 = arith.constant 0 : index
    %c0_5 = arith.constant 0 : index
    %26 = vector.load %arg2[%c0_4, %c0_5] : memref<72x128xbf16, #tpu.memory_space<vmem>>, vector<72x128xbf16>
    %cst_6 = arith.constant dense<0.000000e+00> : vector<128x128xf32>
    %27 = tpu.matmul %25, %26, %cst_6 {dimension_numbers = #tpu.dot_dimension_numbers<[1], [0], [0], [1], [0, 0, 1, 1], [], []>} : vector<128x72xbf16>, vector<72x128xbf16>, vector<128x128xf32> -> vector<128x128xf32>
    %c0_7 = arith.constant 0 : index
    %c0_8 = arith.constant 0 : index
    %28 = vector.load %arg3[%c0_7, %c0_8] : memref<1x128xf32, #tpu.memory_space<vmem>>, vector<1x128xf32>
    %29 = vector.broadcast %28 : vector<1x128xf32> to vector<128x128xf32>
    %30 = arith.addf %27, %29 : vector<128x128xf32>
    %31 = arith.truncf %30 : vector<128x128xf32> to vector<128x128xbf16>
    %c0_9 = arith.constant 0 : index
    %c0_10 = arith.constant 0 : index
    %c0_11 = arith.constant 0 : index
    %32 = vector.load %arg4[%c0_9, %c0_10, %c0_11] : memref<1x128x128xbf16, #tpu.memory_space<vmem>>, vector<1x128x128xbf16>
    %33 = vector.shape_cast %32 : vector<1x128x128xbf16> to vector<128x128xbf16>
    %34 = vector.shape_cast %31 : vector<128x128xbf16> to vector<1x128x128xbf16>
    tpu.vector_store %arg4[%c0_9, %c0_10, %c0_11], %34 {strides = array<i32>} : memref<1x128x128xbf16, #tpu.memory_space<vmem>>, vector<1x128x128xbf16>,
    return
  }
  func.func @transform_0(%arg0: i32) -> (i32, i32, i32, i32) {
    %c0_i32 = arith.constant 0 : i32
    %c0_i32_0 = arith.constant 0 : i32
    %c0_i32_1 = arith.constant 0 : i32
    %c0_i32_2 = arith.constant 0 : i32
    return %arg0, %c0_i32, %c0_i32_0, %c0_i32_1 : i32, i32, i32, i32
  }
  func.func @transform_1(%arg0: i32) -> (i32, i32) {
    %c0_i32 = arith.constant 0 : i32
    %c0_i32_0 = arith.constant 0 : i32
    %c0_i32_1 = arith.constant 0 : i32
    return %c0_i32, %c0_i32_0 : i32, i32
  }
  func.func @transform_2(%arg0: i32) -> (i32, i32) {
    %c0_i32 = arith.constant 0 : i32
    %c0_i32_0 = arith.constant 0 : i32
    %c0_i32_1 = arith.constant 0 : i32
    return %c0_i32, %c0_i32_0 : i32, i32
  }
  func.func @transform_3(%arg0: i32) -> (i32, i32, i32) {
    %c0_i32 = arith.constant 0 : i32
    %c0_i32_0 = arith.constant 0 : i32
    %c0_i32_1 = arith.constant 0 : i32
    return %arg0, %c0_i32, %c0_i32_0 : i32, i32, i32
  }
}

</mosaic_0001>

<bundles_post_ra>
// kernel: rec_net_decoder_part_forward.1
= control target key start
LH: loop header
LB: loop body
LE: loop exit
PB: predicated region body
PF: predicated region fallthrough
CT: control target
= control target key end

     0   :  { %s1550_s12 = smov 0   ;;  %s2152_s0 = inlined_call_operand.vmem [shape: bf16[4,10,18,8], index: 0, kind: input, shape index: {}]   ;;  %s2153_s1 = inlined_call_operand.vmem [shape: bf16[72,128], index: 1, kind: input, shape index: {}]   ;;  %s2154_s2 = inlined_call_operand.vmem [shape: f32[1,128], index: 2, kind: input, shape index: {}]   ;;  %s2155_s3 = inlined_call_operand.vmem [shape: bf16[4,128,128], index: 3, kind: output, shape index: {}]  }
   0x1 LB: > { %s1297_s13 = sadd.s32 4294967295, %s1520_s12   ;;  %p1301_p0 = scmp.ge.s32.totalorder %s1520_s12, 1  ;;  %s1520_s12 = sphi %s1550_s12, %s13_s12  }
   0x2   : > { %p137_p1 = scmp.lt.s32.totalorder %s1520_s12, 5 }
   0x4   : > { %p138_p2 = pnand %p1301_p0, %p137_p1 }
   0x5   : > { %p161_p3 = scmp.lt.s32.totalorder (!%p138_p2), %s1297_s13, 3  ;;  %s1522_s18 = smov (!%p138_p2), 24  }
   0x6   : > { %141 = sbr.rel (%p138_p2) target bundleno = 486 (0x1e6), region = 32  ;;  %s1523_s19 = smov (!%p138_p2), 16  }
   0x7   : > { %s1524_s20 = smov (!%p138_p2), 8   ;;  %s1525_s21 = smov (!%p138_p2), 32  }
   0x8   : > { %s1526_s22 = smov (!%p138_p2), 40   ;;  %s1527_s23 = smov (!%p138_p2), 48  }
   0x9   : > { %s1528_s24 = smov (!%p138_p2), 56   ;;  %s1529_s25 = smov (!%p138_p2), 64  }
   0xb   : > { %s2161_s13 = smov (!%p161_p3, %s1297_s13), 3  ;;  %vm512_vm4 = vcmask 1042432   ;;  %vm513_vm5 = vcmask 1046532  }
   0xc   : > { %s1492_s14 = smul.u32 120, %s2161_s13  ;;  %s1377_s11 = sshll.u32 %s2161_s13, 6 }
   0xd   : > { %s2139_s16 = scalar_lea.vmem %s2155_s3, %s1377_s11 }
   0xe   : > { %s1564_s17 = scalar_lea.vmem %s2152_s0, %s1492_s14 }
   0xf   : > { %v188_v0 = vld [vmem:[%s1564_s17 + $0x3c] sm:$0xf]  ;;  %v189_v1 = vld [vmem:[%s1564_s17 + $0x40] sm:$0xf]  ;;  %v176_v2 = vld [vmem:[%s1564_s17 + $0xc] sm:$0xf] }
  0x10   : > { %vm218_vm0 = vcmp.ge.bf16.partialorder %v188_v0, 0  ;;  %vm219_vm1 = vcmp.ge.bf16.partialorder %v189_v1, 0  ;;  %v248_v3 = vmul.bf16 1045249613, %v188_v0  ;;  %v249_v4 = vmul.bf16 1045249613, %v189_v1 }
  0x11   : > { %v177_v5 = vld [vmem:[%s1564_s17 + $0x10] sm:$0xf]  ;;  %vm206_vm2 = vcmp.ge.bf16.partialorder %v176_v2, 0  ;;  %v236_v6 = vmul.bf16 1045249613, %v176_v2 }
  0x12   : > { %v1570_v7 = vsel %vm218_vm0, %v188_v0, %v248_v3  ;;  %v1572_v8 = vsel %vm219_vm1, %v189_v1, %v249_v4  ;;  %vm207_vm3 = vcmp.ge.bf16.partialorder %v177_v5, 0  ;;  %v237_v9 = vmul.bf16 1045249613, %v177_v5  ;;  %v191_v10 = vld [vmem:[%s1564_s17 + $0x48] sm:$0xf] }
  0x13   : > { %v430_v11 = vshrl.u32 %v1572_v8, 16  ;;  %v1578_v12 = vcombine.low %v1570_v7, %v1572_v8  ;;  %v417_v13 = vshrl.u32 %v1570_v7, 16  ;;  %v420_v14 = vshll.u32 %v1570_v7, 16  ;;  %v192_v15 = vld [vmem:[%s1564_s17 + $0x4c] sm:$0xf] }
  0x14   : > { %v1583_v16 = vsel %vm206_vm2, %v176_v2, %v236_v6  ;;  %v1585_v17 = vsel %vm207_vm3, %v177_v5, %v237_v9  ;;  %vm221_vm6 = vcmp.ge.bf16.partialorder %v191_v10, 0  ;;  %vm222_vm7 = vcmp.ge.bf16.partialorder %v192_v15, 0  ;;  %v179_v18 = vld [vmem:[%s1564_s17 + $0x18] sm:$0xf]  ;;  %v180_v19 = vld [vmem:[%s1564_s17 + $0x1c] sm:$0xf]  ;;  %vm1650_vm2 = vmor %vm512_vm4, %vm513_vm5 }
  0x15   : > { %754 = vrot.lane.b32.xlu1 %v1578_v12, %s1522_s18  ;;  %v330_v20 = vshll.u32 %v1585_v17, 16  ;;  %v334_v21 = vshrl.u32 %v1585_v17, 16  ;;  %v1595_v22 = vcombine.low %v1583_v16, %v1585_v17  ;;  %v321_v23 = vshrl.u32 %v1583_v16, 16  ;;  %v185_v24 = vld [vmem:[%s1564_s17 + $0x30] sm:$0xf] }
  0x16   : > { %v324_v25 = vshll.u32 %v1583_v16, 16  ;;  %v251_v26 = vmul.bf16 1045249613, %v191_v10  ;;  %v252_v27 = vmul.bf16 1045249613, %v192_v15  ;;  %vm209_vm8 = vcmp.ge.bf16.partialorder %v179_v18, 0 }
  0x17   : > { %v1600_v28 = vrot.slane %v334_v21, 4  ;;  %746 = vrot.lane.b32.xlu0 %v1595_v22, %s1522_s18  ;;  %v1604_v29 = vrot.slane %v321_v23, 4  ;;  %vm210_vm9 = vcmp.ge.bf16.partialorder %v180_v19, 0  ;;  %v239_v30 = vmul.bf16 1045249613, %v179_v18 }
  0x18   : > { %v1606_v31 = vrot.slane %v324_v25, 5  ;;  %v1609_v32 = vsel %vm221_vm6, %v191_v10, %v251_v26  ;;  %v1612_v33 = vsel %vm222_vm7, %v192_v15, %v252_v27  ;;  %v240_v34 = vmul.bf16 1045249613, %v180_v19  ;;  %v186_v35 = vld [vmem:[%s1564_s17 + $0x34] sm:$0xf] }
  0x19   : > { %v441_v36 = vshrl.u32 %v1609_v32, 16  ;;  %v444_v37 = vshll.u32 %v1609_v32, 16  ;;  %v454_v38 = vshrl.u32 %v1612_v33, 16  ;;  %v1620_v39 = vcombine.low %v1609_v32, %v1612_v33  ;;  %v187_v40 = vld [vmem:[%s1564_s17 + $0x38] sm:$0x1] }
  0x1a   : > { %v1624_v41 = vsel %vm209_vm8, %v179_v18, %v239_v30  ;;  %v1626_v42 = vsel %vm210_vm9, %v180_v19, %v240_v34  ;;  %vm215_vm10 = vcmp.ge.bf16.partialorder %v185_v24, 0  ;;  %vm216_vm11 = vcmp.ge.bf16.partialorder %v186_v35, 0  ;;  %v173_v43 = vld [vmem:[%s1564_s17] sm:$0xf]  ;;  %v174_v44 = vld [vmem:[%s1564_s17 + $0x4] sm:$0xf] }
  0x1b   : > { %756 = vrot.lane.b32.xlu1 %v1620_v39, %s1522_s18  ;;  %v345_v45 = vshrl.u32 %v1624_v41, 16  ;;  %v348_v46 = vshll.u32 %v1624_v41, 16  ;;  %v358_v47 = vshrl.u32 %v1626_v42, 16  ;;  %v1637_v48 = vcombine.low %v1624_v41, %v1626_v42  ;;  %v175_v49 = vld [vmem:[%s1564_s17 + $0x8] sm:$0x1] }
  0x1c   : > { %vm217_vm12 = vcmp.ge.bf16.partialorder %v187_v40, 0  ;;  %v245_v50 = vmul.bf16 1045249613, %v185_v24  ;;  %v246_v51 = vmul.bf16 1045249613, %v186_v35  ;;  %vm203_vm13 = vcmp.ge.bf16.partialorder %v173_v43, 0 }
  0x1d   : > { %748 = vrot.lane.b32.xlu0 %v1637_v48, %s1522_s18  ;;  %v247_v52 = vmul.bf16 1045249613, %v187_v40  ;;  %vm204_vm14 = vcmp.ge.bf16.partialorder %v174_v44, 0  ;;  %vm205_vm15 = vcmp.ge.bf16.partialorder %v175_v49, 0  ;;  %v233_v53 = vmul.bf16 1045249613, %v173_v43 }
  0x1e   : > { %vm293_vm0 = vsmask.f32 3328  ;;  %vm294_vm1 = vsmask.f32 7440  ;;  %v1643_v54 = vsel %vm215_vm10, %v185_v24, %v245_v50  ;;  %v1646_v55 = vsel %vm216_vm11, %v186_v35, %v246_v51  ;;  %v190_v63 = vld [vmem:[%s1564_s17 + $0x44] sm:$0x1] }
  0x1f   : > { %v234_v57 = vmul.bf16 1045249613, %v174_v44  ;;  %v235_v58 = vmul.bf16 1045249613, %v175_v49  ;;  %v1655_v59 = vsel %vm217_vm12, %v187_v40, %v247_v52  ;;  %v1309_v60 = vrot.slane %v1643_v54, 9  ;;  %vm1708_vm5 = vmor %vm293_vm0, %vm294_vm1 }
  0x20   : > { %v545_v61 = vrot.slane %v1646_v55, 5  ;;  %v1660_v62 = vsel %vm203_vm13, %v173_v43, %v233_v53  ;;  %v548_v0 = vrot.slane %v1655_v59, 5  ;;  %v178_v4 = vld [vmem:[%s1564_s17 + $0x14] sm:$0x1]  ;;  %vm220_vm3 = vcmp.ge.bf16.partialorder %v190_v63, 0 }
  0x21   : > { %v1665_v1 = vsel %vm204_vm14, %v174_v44, %v234_v57  ;;  %v1668_v2 = vsel %vm205_vm15, %v175_v49, %v235_v58  ;;  %v1305_v3 = vrot.slane %v1660_v62, 9  ;;  %v250_v15 = vmul.bf16 1045249613, %v190_v63 }
  0x22   : > { %v546_v5 = vsel %vm1650_vm2, %v1309_v60, %v545_v61  ;;  %v547_v6 = vrot.slane %v545_v61, 4  ;;  %v517_v9 = vrot.slane %v1665_v1, 5  ;;  %v520_v10 = vrot.slane %v1668_v2, 5 }
  0x23   : > { %v1310_v18 = vrot.slane %v1570_v7, 9  ;;  %v552_v19 = vrot.slane %v1572_v8, 5  ;;  %vm208_vm4 = vcmp.ge.bf16.partialorder %v178_v4, 0  ;;  %v280_v26 = vsel %vm220_vm3, %v190_v63, %v250_v15 }
  0x24   : > { %v549_v21 = vsel %vm1650_vm2, %v547_v6, %v548_v0  ;;  %v518_v23 = vsel %vm1650_vm2, %v1305_v3, %v517_v9  ;;  %v519_v24 = vrot.slane %v517_v9, 4  ;;  %v555_v35 = vrot.slane %v280_v26, 5 }
  0x25   : > { %v1682_v25 = vcombine.low %v546_v5, %v549_v21  ;;  %v553_v27 = vsel %vm1650_vm2, %v1310_v18, %v552_v19  ;;  %v554_v30 = vrot.slane %v552_v19, 4  ;;  %v238_v40 = vmul.bf16 1045249613, %v178_v4 }
  0x26   : > { %v521_v34 = vsel %vm1650_vm2, %v519_v24, %v520_v10  ;;  %v1306_v43 = vrot.slane %v1583_v16, 9  ;;  %v524_v49 = vrot.slane %v1585_v17, 5  ;;  %v327_v50 = vor.u32 %v1606_v31, %v1604_v29  ;;  %v1512_v17 = vld [vmem:[%s2153_s1 + $0x8] sm:$0xff]  }
  0x27   : > { %735 = vrot.lane.b32.xlu1 %v1682_v25, %s1523_s19  ;;  %v1331_v44 = vcombine.low %v518_v23, %v521_v34  ;;  %v332_v51 = vrot.slane %v330_v20, 5  ;;  %v556_v52 = vsel %vm1650_vm2, %v554_v30, %v555_v35  ;;  %v268_v53 = vsel %vm208_vm4, %v178_v4, %v238_v40 }
  0x28   : > { %v297_v16 = vshrl.u32 %v1660_v62, 16  ;;  %v300_v57 = vshll.u32 %v1660_v62, 16  ;;  %v1702_v58 = vcombine.low %v553_v27, %v556_v52  ;;  %v525_v60 = vsel %vm1650_vm2, %v1306_v43, %v524_v49 }
  0x29   : > { %727 = vrot.lane.b32.xlu0 %v1331_v44, %s1523_s19  ;;  %v526_v29 = vrot.slane %v524_v49, 4  ;;  %v527_v31 = vrot.slane %v268_v53, 5  ;;  %v328_v20 = vrot.slane %v327_v50, 4  ;;  %v337_v61 = vor.u32 %v1600_v28, %v332_v51 }
  0x2a   : > { %v340_v63 = vshll.u32 %v268_v53, 16  ;;  %v299_v0 = vrot.slane %v297_v16, 4  ;;  %v302_v4 = vrot.slane %v300_v57, 5  ;;  %v306_v5 = vshll.u32 %v1665_v1, 16 }
  0x2b   : > { %737 = vrot.lane.b32.xlu1 %v1702_v58, %s1523_s19  ;;  %v528_v3 = vsel %vm1650_vm2, %v526_v29, %v527_v31  ;;  %v310_v6 = vshrl.u32 %v1665_v1, 16  ;;  %v333_v10 = vsel %vm1708_vm5, %v328_v20, %v332_v51  ;;  %v338_v15 = vrot.slane %v337_v61, 4 }
  0x2c   : > { %v1719_v9 = vcombine.low %v525_v60, %v528_v3  ;;  %v342_v28 = vrot.slane %v340_v63, 5  ;;  %v303_v18 = vor.u32 %v302_v4, %v299_v0  ;;  %v308_v19 = vrot.slane %v306_v5, 5 }
  0x2d   : > { %v312_v21 = vrot.slane %v310_v6, 4  ;;  %v316_v23 = vshll.u32 %v1668_v2, 16  ;;  %v419_v27 = vrot.slane %v417_v13, 4  ;;  %v422_v30 = vrot.slane %v420_v14, 5 }
  0x2e   : > { %729 = vrot.lane.b32.xlu0 %v1719_v9, %s1523_s19  ;;  %v343_v24 = vsel %vm1708_vm5, %v338_v15, %v342_v28  ;;  %v426_v34 = vshll.u32 %v1572_v8, 16  ;;  %v304_v40 = vrot.slane %v303_v18, 4  ;;  %v432_v50 = vrot.slane %v430_v11, 4  ;;  %v193_v8 = vld [vmem:[%s1564_s17 + $0x50] sm:$0x1] }
  0x2f   : > { %v1733_v35 = vcombine.low %v333_v10, %v343_v24  ;;  %v313_v43 = vor.u32 %v312_v21, %v308_v19  ;;  %v318_v2 = vrot.slane %v316_v23, 5  ;;  %v423_v44 = vor.u32 %v422_v30, %v419_v27  ;;  %v181_v18 = vld [vmem:[%s1564_s17 + $0x20] sm:$0x1] }
  0x30   : > { %v428_v49 = vrot.slane %v426_v34, 5  ;;  %v436_v51 = vshll.u32 %v280_v26, 16  ;;  %v309_v7 = vsel %vm1708_vm5, %v304_v40, %v308_v19  ;;  %v393_v14 = vshrl.u32 %v1643_v54, 16 }
  0x31   : > { %689 = vrot.lane.b32.xlu1 %v1733_v35, %s1524_s20  ;;  %v314_v13 = vrot.slane %v313_v43, 4  ;;  %v396_v52 = vshll.u32 %v1643_v54, 16  ;;  %v424_v53 = vrot.slane %v423_v44, 4  ;;  %v402_v60 = vshll.u32 %v1646_v55, 16 }
  0x32   : > { %v433_v16 = vor.u32 %v432_v50, %v428_v49  ;;  %v438_v57 = vrot.slane %v436_v51, 5  ;;  %v395_v26 = vrot.slane %v393_v14, 4  ;;  %v406_v31 = vshrl.u32 %v1646_v55, 16 }
  0x33   : > { %v319_v11 = vsel %vm1708_vm5, %v314_v13, %v318_v2  ;;  %v398_v29 = vrot.slane %v396_v52, 5  ;;  %v429_v61 = vsel %vm1708_vm5, %v424_v53, %v428_v49  ;;  %v404_v0 = vrot.slane %v402_v60, 5 }
  0x34   : > { %v1323_v20 = vcombine.low %v309_v7, %v319_v11  ;;  %v434_v63 = vrot.slane %v433_v16, 4  ;;  %v408_v4 = vrot.slane %v406_v31, 4  ;;  %v412_v5 = vshll.u32 %v1655_v59, 16 }
  0x35   : > { %v399_v3 = vor.u32 %v398_v29, %v395_v26  ;;  %vm223_vm6 = vcmp.ge.bf16.partialorder %v193_v8, 0  ;;  %v253_v10 = vmul.bf16 1045249613, %v193_v8  ;;  %v443_v15 = vrot.slane %v441_v36, 4 }
  0x36   : > { %687 = vrot.lane.b32.xlu0 %v1323_v20, %s1524_s20  ;;  %v439_v6 = vsel %vm1708_vm5, %v434_v63, %v438_v57  ;;  %v446_v28 = vrot.slane %v444_v37, 5  ;;  %v409_v23 = vor.u32 %v408_v4, %v404_v0  ;;  %v414_v24 = vrot.slane %v412_v5, 5  ;;  %v195_v4 = vld [vmem:[%s1564_s17 + $0x58] sm:$0xf] }
  0x37   : > { %v1759_v19 = vcombine.low %v429_v61, %v439_v6  ;;  %v400_v21 = vrot.slane %v399_v3, 4  ;;  %v283_v59 = vsel %vm223_vm6, %v193_v8, %v253_v10  ;;  %v450_v30 = vshll.u32 %v1612_v33, 16  ;;  %v182_v10 = vld [vmem:[%s1564_s17 + $0x24] sm:$0xf] }
  0x38   : > { %v447_v27 = vor.u32 %v446_v28, %v443_v15  ;;  %v456_v34 = vrot.slane %v454_v38, 4  ;;  %v410_v37 = vrot.slane %v409_v23, 4  ;;  %v460_v40 = vshll.u32 %v283_v59, 16 }
  0x39   : > { %697 = vrot.lane.b32.xlu1 %v1759_v19, %s1524_s20  ;;  %v405_v36 = vsel %vm1708_vm5, %v400_v21, %v404_v0  ;;  %vm211_vm7 = vcmp.ge.bf16.partialorder %v181_v18, 0  ;;  %v452_v2 = vrot.slane %v450_v30, 5  ;;  %v241_v44 = vmul.bf16 1045249613, %v181_v18 }
  0x3a   : > { %v448_v43 = vrot.slane %v447_v27, 4  ;;  %v347_v49 = vrot.slane %v345_v45, 4  ;;  %v415_v50 = vsel %vm1708_vm5, %v410_v37, %v414_v24  ;;  %v350_v38 = vrot.slane %v348_v46, 5 }
  0x3b   : > { %v354_v51 = vshll.u32 %v1626_v42, 16  ;;  %v1775_v7 = vcombine.low %v405_v36, %v415_v50  ;;  %v457_v13 = vor.u32 %v456_v34, %v452_v2  ;;  %v462_v14 = vrot.slane %v460_v40, 5  ;;  %v184_v50 = vld [vmem:[%s1564_s17 + $0x2c] sm:$0x1] }
  0x3c   : > { %v271_v52 = vsel %vm211_vm7, %v181_v18, %v241_v44  ;;  %v351_v53 = vor.u32 %v350_v38, %v347_v49  ;;  %v360_v16 = vrot.slane %v358_v47, 4  ;;  %v453_v46 = vsel %vm1708_vm5, %v448_v43, %v452_v2  ;;  %v194_v47 = vld [vmem:[%s1564_s17 + $0x54] sm:$0xf] }
  0x3d   : > { %773 = vrot.lane.b32.xlu1 %v1759_v19, %s1525_s21  ;;  %v356_v45 = vrot.slane %v354_v51, 5  ;;  %v364_v57 = vshll.u32 %v271_v52, 16  ;;  %695 = vrot.lane.b32.xlu0 %v1775_v7, %s1524_s20  ;;  %v458_v60 = vrot.slane %v457_v13, 4  ;;  %v1311_v8 = vrot.slane %v1609_v32, 9 }
  0x3e   : > { %v559_v11 = vrot.slane %v1612_v33, 5  ;;  %v352_v26 = vrot.slane %v351_v53, 4  ;;  %v562_v20 = vrot.slane %v283_v59, 5  ;;  %v1307_v0 = vrot.slane %v1624_v41, 9  ;;  %v183_v41 = vld [vmem:[%s1564_s17 + $0x28] sm:$0xf] }
  0x3f   : > { %v361_v29 = vor.u32 %v360_v16, %v356_v45  ;;  %v366_v31 = vrot.slane %v364_v57, 5  ;;  %v463_v61 = vsel %vm1708_vm5, %v458_v60, %v462_v14  ;;  %v531_v3 = vrot.slane %v1626_v42, 5  ;;  %v196_v59 = vld [vmem:[%s1564_s17 + $0x5c] sm:$0x1] }
  0x40   : > { %v561_v63 = vrot.slane %v559_v11, 4  ;;  %v1793_v5 = vcombine.low %v453_v46, %v463_v61  ;;  %v357_v32 = vsel %vm1708_vm5, %v352_v26, %v356_v45  ;;  %v534_v6 = vrot.slane %v271_v52, 5 }
  0x41   : > { %v362_v33 = vrot.slane %v361_v29, 4  ;;  %765 = vrot.lane.b32.xlu0 %v1733_v35, %s1525_s21  ;;  %v560_v15 = vsel %vm1650_vm2, %v1311_v8, %v559_v11  ;;  %v533_v28 = vrot.slane %v531_v3, 4  ;;  %vm224_vm8 = vcmp.ge.bf16.partialorder %v194_v47, 0 }
  0x42   : > { %775 = vrot.lane.b32.xlu1 %v1793_v5, %s1525_s21  ;;  %v563_v18 = vsel %vm1650_vm2, %v561_v63, %v562_v20  ;;  %vm225_vm9 = vcmp.ge.bf16.partialorder %v195_v4, 0  ;;  %v254_v21 = vmul.bf16 1045249613, %v194_v47  ;;  %v532_v35 = vsel %vm1650_vm2, %v1307_v0, %v531_v3 }
  0x43   : > { %v367_v42 = vsel %vm1708_vm5, %v362_v33, %v366_v31  ;;  %v255_v24 = vmul.bf16 1045249613, %v195_v4  ;;  %vm212_vm10 = vcmp.ge.bf16.partialorder %v182_v10, 0  ;;  %v535_v27 = vsel %vm1650_vm2, %v533_v28, %v534_v6  ;;  %v197_v28 = vld [vmem:[%s1564_s17 + $0x60] sm:$0xf] }
  0x44   : > { %v1809_v23 = vcombine.low %v357_v32, %v367_v42  ;;  %v1816_v30 = vsel %vm224_vm8, %v194_v47, %v254_v21  ;;  %vm213_vm11 = vcmp.ge.bf16.partialorder %v183_v41, 0  ;;  %v242_v34 = vmul.bf16 1045249613, %v182_v10  ;;  %v198_v42 = vld [vmem:[%s1564_s17 + $0x64] sm:$0xf] }
  0x45   : > { %v1820_v36 = vsel %vm225_vm9, %v195_v4, %v255_v24  ;;  %v465_v37 = vshrl.u32 %v1816_v30, 16  ;;  %v468_v40 = vshll.u32 %v1816_v30, 16  ;;  %v243_v43 = vmul.bf16 1045249613, %v183_v41 }
  0x46   : > { %767 = vrot.lane.b32.xlu0 %v1809_v23, %s1525_s21  ;;  %792 = vrot.lane.b32.xlu1 %v1702_v58, %s1526_s22  ;;  %v1826_v2 = vcombine.low %v560_v15, %v563_v18  ;;  %v478_v44 = vshrl.u32 %v1820_v36, 16  ;;  %v1829_v49 = vsel %vm212_vm10, %v182_v10, %v242_v34  ;;  %vm226_vm12 = vcmp.ge.bf16.partialorder %v196_v59, 0 }
  0x47   : > { %v1832_v38 = vsel %vm213_vm11, %v183_v41, %v243_v43  ;;  %v369_v51 = vshrl.u32 %v1829_v49, 16  ;;  %v372_v13 = vshll.u32 %v1829_v49, 16  ;;  %v256_v14 = vmul.bf16 1045249613, %v196_v59 }
  0x48   : > { %v1836_v52 = vcombine.low %v532_v35, %v535_v27  ;;  %v382_v53 = vshrl.u32 %v1832_v38, 16  ;;  %v467_v45 = vrot.slane %v465_v37, 4  ;;  %v470_v16 = vrot.slane %v468_v40, 5  ;;  %v199_v27 = vld [vmem:[%s1564_s17 + $0x68] sm:$0x1] }
  0x49   : > { %v1841_v57 = vsel %vm226_vm12, %v196_v59, %v256_v14  ;;  %v474_v46 = vshll.u32 %v1820_v36, 16  ;;  %v480_v60 = vrot.slane %v478_v44, 4  ;;  %vm214_vm13 = vcmp.ge.bf16.partialorder %v184_v50, 0 }
  0x4a   : > { %784 = vrot.lane.b32.xlu0 %v1719_v9, %s1526_s22  ;;  %794 = vrot.lane.b32.xlu1 %v1826_v2, %s1526_s22  ;;  %v471_v8 = vor.u32 %v470_v16, %v467_v45  ;;  %v484_v11 = vshll.u32 %v1841_v57, 16  ;;  %v244_v26 = vmul.bf16 1045249613, %v184_v50  ;;  %v371_v29 = vrot.slane %v369_v51, 4 }
  0x4b   : > { %v476_v31 = vrot.slane %v474_v46, 5  ;;  %v374_v20 = vrot.slane %v372_v13, 5  ;;  %v378_v47 = vshll.u32 %v1832_v38, 16  ;;  %v384_v9 = vrot.slane %v382_v53, 4 }
  0x4c   : > { %v1848_v61 = vsel %vm214_vm13, %v184_v50, %v244_v26  ;;  %v472_v63 = vrot.slane %v471_v8, 4  ;;  %v1856_v32 = vcombine.low %v1816_v30, %v1820_v36  ;;  %v486_v33 = vrot.slane %v484_v11, 5 }
  0x4d   : > { %v481_v0 = vor.u32 %v480_v60, %v476_v31  ;;  %v375_v3 = vor.u32 %v374_v20, %v371_v29  ;;  %v380_v4 = vrot.slane %v378_v47, 5  ;;  %v388_v6 = vshll.u32 %v1848_v61, 16  ;;  %v200_v60 = vld [vmem:[%s1564_s17 + $0x6c] sm:$0xf] }
  0x4e   : > { %786 = vrot.lane.b32.xlu0 %v1836_v52, %s1526_s22  ;;  %811 = vrot.lane.b32.xlu1 %v1620_v39, %s1527_s23  ;;  %v1865_v18 = vcombine.low %v1829_v49, %v1832_v38  ;;  %v477_v21 = vsel %vm1708_vm5, %v472_v63, %v476_v31  ;;  %vm227_vm14 = vcmp.ge.bf16.partialorder %v197_v28, 0  ;;  %v1312_v34 = vrot.slane %v1816_v30, 9  ;;  %v201_v31 = vld [vmem:[%s1564_s17 + $0x70] sm:$0xf]  ;;  %v202_v63 = vld [vmem:[%s1564_s17 + $0x74] sm:$0x1] }
  0x4f   : > { %v482_v10 = vrot.slane %v481_v0, 4  ;;  %v385_v15 = vor.u32 %v384_v9, %v380_v4  ;;  %v376_v41 = vrot.slane %v375_v3, 4  ;;  %v390_v59 = vrot.slane %v388_v6, 5 }
  0x50   : > { %v566_v37 = vrot.slane %v1820_v36, 5  ;;  %vm228_vm15 = vcmp.ge.bf16.partialorder %v198_v42, 0  ;;  %v257_v40 = vmul.bf16 1045249613, %v197_v28  ;;  %v569_v44 = vrot.slane %v1841_v57, 5 }
  0x51   : > { %v487_v35 = vsel %vm1708_vm5, %v482_v10, %v486_v33  ;;  %v386_v24 = vrot.slane %v385_v15, 4  ;;  %v381_v43 = vsel %vm1708_vm5, %v376_v41, %v380_v4  ;;  %v258_v50 = vmul.bf16 1045249613, %v198_v42 }
  0x52   : > { %803 = vrot.lane.b32.xlu0 %v1637_v48, %s1527_s23  ;;  %813 = vrot.lane.b32.xlu1 %v1856_v32, %s1527_s23  ;;  %v1881_v51 = vcombine.low %v1643_v54, %v1646_v55  ;;  %v1885_v13 = vcombine.low %v477_v21, %v487_v35  ;;  %v1887_v30 = vsel %vm227_vm14, %v197_v28, %v257_v40  ;;  %vm229_vm0 = vcmp.ge.bf16.partialorder %v199_v27, 0 }
  0x53   : > { %v259_v36 = vmul.bf16 1045249613, %v199_v27  ;;  %v391_v14 = vsel %vm1708_vm5, %v386_v24, %v390_v59  ;;  %v1893_v54 = vsel %vm228_vm15, %v198_v42, %v258_v50  ;;  %v572_v55 = vshrl.u32 %v1887_v30, 16 }
  0x54   : > { %v575_v53 = vshll.u32 %v1887_v30, 16  ;;  %v1308_v45 = vrot.slane %v1829_v49, 9  ;;  %v585_v16 = vshrl.u32 %v1893_v54, 16  ;;  %v581_v46 = vshll.u32 %v1893_v54, 16 }
  0x55   : > { %v1899_v57 = vsel %vm229_vm0, %v199_v27, %v259_v36  ;;  %v567_v8 = vsel %vm1650_vm2, %v1312_v34, %v566_v37  ;;  %v574_v11 = vrot.slane %v572_v55, 4  ;;  %v1909_v20 = vcombine.low %v381_v43, %v391_v14 }
  0x56   : > { %805 = vrot.lane.b32.xlu0 %v1865_v18, %s1527_s23  ;;  %830 = vrot.lane.b32.xlu1 %v1793_v5, %s1528_s24  ;;  %v577_v26 = vrot.slane %v575_v53, 5  ;;  %v591_v29 = vshll.u32 %v1899_v57, 16  ;;  %v538_v49 = vrot.slane %v1832_v38, 5  ;;  %v583_v47 = vrot.slane %v581_v46, 5 }
  0x57   : > { %v587_v9 = vrot.slane %v585_v16, 4  ;;  %v568_v0 = vrot.slane %v566_v37, 4  ;;  %vm230_vm1 = vcmp.ge.bf16.partialorder %v200_v60, 0  ;;  %vm231_vm3 = vcmp.ge.bf16.partialorder %v201_v31, 0 }
  0x58   : > { %v578_v3 = vor.u32 %v577_v26, %v574_v11  ;;  %v593_v4 = vrot.slane %v591_v29, 5  ;;  %v260_v6 = vmul.bf16 1045249613, %v200_v60  ;;  %v261_v10 = vmul.bf16 1045249613, %v201_v31 }
  0x59   : > { %v588_v33 = vor.u32 %v587_v9, %v583_v47  ;;  %v541_v15 = vrot.slane %v1848_v61, 5  ;;  %vm232_vm4 = vcmp.ge.bf16.partialorder %v202_v63, 0  ;;  %v262_v41 = vmul.bf16 1045249613, %v202_v63 }
  0x5a   : > { %822 = vrot.lane.b32.xlu0 %v1809_v23, %s1528_s24  ;;  %832 = vrot.lane.b32.xlu1 %v1885_v13, %s1528_s24  ;;  %v579_v28 = vrot.slane %v578_v3, 4  ;;  %v540_v38 = vrot.slane %v538_v49, 4  ;;  %v1918_v21 = vsel %vm230_vm1, %v200_v60, %v260_v6  ;;  %v1920_v35 = vsel %vm231_vm3, %v201_v31, %v261_v10  ;;  %v1509_v31 = vld [vmem:[%s2153_s1 + $0x20] ss:$0 sps:$4 sm:$0xff]  }
  0x5b   : > { %v589_v42 = vrot.slane %v588_v33, 4  ;;  %v606_v61 = vshrl.u32 %v1918_v21, 16  ;;  %v609_v59 = vshll.u32 %v1918_v21, 16  ;;  %v619_v27 = vshrl.u32 %v1920_v35, 16  ;;  %v1513_v3 = vld [vmem:[%s2153_s1] sm:$0xff]  }
  0x5c   : > { %v584_v24 = vsel %vm1708_vm5, %v579_v28, %v583_v47  ;;  %v570_v34 = vsel %vm1650_vm2, %v568_v0, %v569_v44  ;;  %v1933_v40 = vsel %vm232_vm4, %v202_v63, %v262_v41  ;;  %v615_v43 = vshll.u32 %v1920_v35, 16  ;;  %v1511_v0 = vld [vmem:[%s2153_s1 + $0x10] sm:$0xff]  }
  0x5d   : > { %v594_v37 = vsel %vm1708_vm5, %v589_v42, %v593_v4  ;;  %v608_v36 = vrot.slane %v606_v61, 4  ;;  %v611_v14 = vrot.slane %v609_v59, 5  ;;  %v621_v55 = vrot.slane %v619_v27, 4 }
  0x5e   : > { %824 = vrot.lane.b32.xlu0 %v1909_v20, %s1528_s24  ;;  %849 = vrot.lane.b32.xlu1 %v1826_v2, %s1529_s25  ;;  %v1936_v50 = vcombine.low %v584_v24, %v594_v37  ;;  %v617_v53 = vrot.slane %v615_v43, 5  ;;  %v625_v16 = vshll.u32 %v1933_v40, 16  ;;  %v1943_v44 = vcombine.low %v567_v8, %v570_v34 }
  0x5f   : > { %v539_v46 = vsel %vm1650_vm2, %v1308_v45, %v538_v49  ;;  %v542_v60 = vsel %vm1650_vm2, %v540_v38, %v541_v15  ;;  %v612_v11 = vor.u32 %v611_v14, %v608_v36  ;;  %v1510_v45 = vld [vmem:[%s2153_s1 + $0x18] sm:$0xff]   ;;  %vm1061_vm6 = vcmask 1043456  }
  0x60   : > { %v622_v26 = vor.u32 %v621_v55, %v617_v53  ;;  %v627_v29 = vrot.slane %v625_v16, 5  ;;  %1490 = vmatprep.subr.msk.bf16.mxu0 %vm1061_vm6, %v1509_v31  ;;  %1491 = vmatprep.subr.msk.bf16.mxu1 %vm1061_vm6, %v1509_v31  ;;  %v1063_v63 = vsel %vm1061_vm6, %v1509_v31, 0  ;;  %v1313_v4 = vrot.slane %v1887_v30, 9 }
  0x61   : > { %v613_v47 = vrot.slane %v612_v11, 4  ;;  %1455 = vmatpush3.bf16.msra.mxu0 %v1063_v63  ;;  %1485 = vmatpush3.bf16.msra.mxu1 %v1063_v63  ;;  %v603_v6 = vrot.slane %v1899_v57, 5  ;;  %v1342_v57 = vcombine.low %v1918_v21, %v1920_v35  ;;  %v634_v28 = vrot.slane %v1920_v35, 5 }
  0x62   : > { %841 = vrot.lane.b32.xlu0 %v1836_v52, %s1529_s25  ;;  %699 = vrot.lane.b32.xlu1 %v1793_v5, %s1524_s20  ;;  %v1334_v5 = vcombine.low %v539_v46, %v542_v60  ;;  %v623_v8 = vrot.slane %v622_v26, 4  ;;  %v1314_v38 = vrot.slane %v1918_v21, 9  ;;  %v637_v24 = vrot.slane %v1933_v40, 5 }
  0x63   : > { %v618_v49 = vsel %vm1708_vm5, %v613_v47, %v617_v53  ;;  %1456 = vmatprep.subr.bf16.mxu0 %v1510_v45  ;;  %1481 = vmatprep.subr.bf16.mxu1 %v1510_v45  ;;  %v636_v42 = vrot.slane %v634_v28, 4  ;;  %vm899_vm7 = vcmask 195584   ;;  %vm916_vm8 = vcmask 261120  }
  0x64   : > { %v628_v9 = vsel %vm1708_vm5, %v623_v8, %v627_v29  ;;  %v635_v35 = vsel %vm1650_vm2, %v1314_v38, %v634_v28  ;;  %vm882_vm5 = vcmask 130048   ;;  %vm933_vm9 = vcmask 326656  }
  0x65   : > { %1457 = vmatpush3.bf16.msra.mxu0 %v1510_v45  ;;  %1486 = vmatpush3.bf16.msra.mxu1 %v1510_v45  ;;  %v638_v59 = vsel %vm1650_vm2, %v636_v42, %v637_v24  ;;  %vm950_vm10 = vcmask 392192   ;;  %vm967_vm11 = vcmask 457728   ;;  %vm984_vm12 = vcmask 523264  }
  0x66   : > { %691 = vrot.lane.b32.xlu0 %v1809_v23, %s1524_s20  ;;  %851 = vrot.lane.b32.xlu1 %v1943_v44, %s1529_s25  ;;  %v1963_v23 = vcombine.low %v618_v49, %v628_v9  ;;  %v1344_v27 = vcombine.low %v635_v35, %v638_v59  ;;  %vm1044_vm13 = vcmask 588800  }
  0x67   : > { %1458 = vmatprep.subr.bf16.mxu0 %v1511_v0  ;;  %1482 = vmatprep.subr.bf16.mxu1 %v1511_v0 }
  0x69   : > { %1459 = vmatpush3.bf16.msra.mxu0 %v1511_v0  ;;  %1487 = vmatpush3.bf16.msra.mxu1 %v1511_v0 }
  0x6a   : > { %843 = vrot.lane.b32.xlu0 %v1334_v5, %s1529_s25  ;;  %701 = vrot.lane.b32.xlu1 %v1885_v13, %s1524_s20 }
  0x6b   : > { %1460 = vmatprep.subr.bf16.mxu0 %v1512_v17  ;;  %1483 = vmatprep.subr.bf16.mxu1 %v1512_v17 }
  0x6d   : > { %1461 = vmatpush3.bf16.msra.mxu0 %v1512_v17  ;;  %1488 = vmatpush3.bf16.msra.mxu1 %v1512_v17 }
  0x6e   : > { %693 = vrot.lane.b32.xlu0 %v1909_v20, %s1524_s20  ;;  %739 = vrot.lane.b32.xlu1 %v1826_v2, %s1523_s19  ;;  %v1339_v2 = vcombine.low %v1887_v30, %v1893_v54 }
  0x6f   : > { %1462 = vmatprep.subr.bf16.mxu0 %v1513_v3  ;;  %1484 = vmatprep.subr.bf16.mxu1 %v1513_v3 }
  0x71   : > { %1463 = vmatpush3.bf16.msra.mxu0 %v1513_v3  ;;  %1489 = vmatpush3.bf16.msra.mxu1 %v1513_v3 }
  0x72   : > { %731 = vrot.lane.b32.xlu0 %v1836_v52, %s1523_s19  ;;  %741 = vrot.lane.b32.xlu1 %v1943_v44, %s1523_s19  ;;  %v600_v52 = vrot.slane %v1893_v54, 5 }
  0x74   : > { %v602_v33 = vrot.slane %v600_v52, 4  ;;  %v601_v54 = vsel %vm1650_vm2, %v1313_v4, %v600_v52 }
  0x76   : > { %733 = vrot.lane.b32.xlu0 %v1334_v5, %s1523_s19  ;;  %758 = vrot.lane.b32.xlu1 %v1856_v32, %s1522_s18  ;;  %v604_v10 = vsel %vm1650_vm2, %v602_v33, %v603_v6  ;;  %vm857_vm2 = vcmask 64512  }
  0x7a   : > { %750 = vrot.lane.b32.xlu0 %v1865_v18, %s1522_s18  ;;  %760 = vrot.lane.b32.xlu1 %v1339_v2, %s1522_s18 }
  0x7e   : > { %752 = vrot.lane.b32.xlu0 %v1881_v51, %s1522_s18  ;;  %777 = vrot.lane.b32.xlu1 %v1885_v13, %s1525_s21  ;;  %v1341_v13 = vcombine.low %v601_v54, %v604_v10 }
  0x82   : > { %769 = vrot.lane.b32.xlu0 %v1909_v20, %s1525_s21  ;;  %779 = vrot.lane.b32.xlu1 %v1936_v50, %s1525_s21 }
  0x86   : > { %771 = vrot.lane.b32.xlu0 %v1775_v7, %s1525_s21  ;;  %796 = vrot.lane.b32.xlu1 %v1943_v44, %s1526_s22 }
  0x87   : > { %v755_v30 = vpop.permute.xlu1 %754 }
  0x89   : > { %v747_v20 = vpop.permute.xlu0 %746 }
  0x8a   : > { %788 = vrot.lane.b32.xlu0 %v1334_v5, %s1526_s22  ;;  %798 = vrot.lane.b32.xlu1 %v1341_v13, %s1526_s22 }
  0x8d   : > { %v2022_v15 = vpop.permute.xlu1 %756 }
  0x8e   : > { %790 = vrot.lane.b32.xlu0 %v1682_v25, %s1526_s22  ;;  %815 = vrot.lane.b32.xlu1 %v1339_v2, %s1527_s23 }
  0x8f   : > { %v2029_v41 = vpop.permute.xlu0 %748 }
  0x92   : > { %807 = vrot.lane.b32.xlu0 %v1881_v51, %s1527_s23  ;;  %817 = vrot.lane.b32.xlu1 %v1342_v57, %s1527_s23 }
  0x96   : > { %809 = vrot.lane.b32.xlu0 %v1578_v12, %s1527_s23  ;;  %834 = vrot.lane.b32.xlu1 %v1936_v50, %s1528_s24 }
  0x99   : > { %v736_v61 = vpop.permute.xlu1 %735 }
  0x9a   : > { %826 = vrot.lane.b32.xlu0 %v1775_v7, %s1528_s24  ;;  %836 = vrot.lane.b32.xlu1 %v1963_v23, %s1528_s24 }
  0x9b   : > { %v728_v21 = vpop.permute.xlu0 %727 }
  0x9d   : > { %v738_v34 = vpop.permute.xlu1 %737 }
  0x9e   : > { %828 = vrot.lane.b32.xlu0 %v1759_v19, %s1528_s24  ;;  %853 = vrot.lane.b32.xlu1 %v1341_v13, %s1529_s25 }
  0xa0   : > { %v730_v7 = vpop.permute.xlu0 %729 }
  0xa2   : > { %845 = vrot.lane.b32.xlu0 %v1682_v25, %s1529_s25  ;;  %855 = vrot.lane.b32.xlu1 %v1344_v27, %s1529_s25 }
  0xa3   : > { %v690_v37 = vpop.permute.xlu1 %689 }
  0xa4   : > { %v863_v2 = vsel %vm857_vm2, %v1595_v22, %v690_v37 }
  0xa5   : > { %v886_v10 = vsel %vm882_vm5, %v863_v2, %v730_v7 }
  0xa6   : > { %847 = vrot.lane.b32.xlu0 %v1702_v58, %s1529_s25  ;;  %v1315_v58 = vcombine.low %v1660_v62, %v1665_v1  ;;  %v903_v28 = vsel %vm899_vm7, %v886_v10, %v2029_v41 }
  0xa8   : > { %v688_v56 = vpop.permute.xlu0 %687 }
  0xa9   : > { %v860_v47 = vsel %vm857_vm2, %v1315_v58, %v688_v56 }
  0xaa   : > { %v884_v45 = vsel %vm882_vm5, %v860_v47, %v728_v21 }
  0xab   : > { %v698_v40 = vpop.permute.xlu1 %697  ;;  %v901_v9 = vsel %vm899_vm7, %v884_v45, %v747_v20 }
  0xac   : > { %v875_v62 = vsel %vm857_vm2, %v1578_v12, %v698_v40 }
  0xad   : > { %v894_v52 = vsel %vm882_vm5, %v875_v62, %v738_v34 }
  0xae   : > { %v911_v13 = vsel %vm899_vm7, %v894_v52, %v2022_v15 }
  0xaf   : > { %v774_v43 = vpop.permute.xlu1 %773  ;;  %v696_v50 = vpop.permute.xlu0 %695 }
  0xb0   : > { %v872_v60 = vsel %vm857_vm2, %v1881_v51, %v696_v50 }
  0xb1   : > { %v892_v26 = vsel %vm882_vm5, %v872_v60, %v736_v61 }
  0xb2   : > { %v909_v5 = vsel %vm899_vm7, %v892_v26, %v755_v30 }
  0xb3   : > { %v766_v19 = vpop.permute.xlu0 %765  ;;  %v926_v49 = vsel %vm916_vm8, %v909_v5, %v774_v43 }
  0xb4   : > { %v776_v36 = vpop.permute.xlu1 %775  ;;  %v918_v0 = vsel %vm916_vm8, %v901_v9, %v766_v19 }
  0xb5   : > { %v928_v57 = vsel %vm916_vm8, %v911_v13, %v776_v36 }
  0xb8   : > { %v768_v14 = vpop.permute.xlu0 %767  ;;  %v793_v55 = vpop.permute.xlu1 %792 }
  0xb9   : > { %v943_v1 = vsel %vm933_vm9, %v926_v49, %v793_v55  ;;  %v920_v24 = vsel %vm916_vm8, %v903_v28, %v768_v14 }
  0xbc   : > { %v785_v53 = vpop.permute.xlu0 %784  ;;  %v795_v16 = vpop.permute.xlu1 %794 }
  0xbd   : > { %v935_v12 = vsel %vm933_vm9, %v918_v0, %v785_v53  ;;  %v945_v20 = vsel %vm933_vm9, %v928_v57, %v795_v16 }
  0xc0   : > { %v787_v44 = vpop.permute.xlu0 %786  ;;  %v812_v46 = vpop.permute.xlu1 %811 }
  0xc1   : > { %v960_v63 = vsel %vm950_vm10, %v943_v1, %v812_v46  ;;  %v937_v35 = vsel %vm933_vm9, %v920_v24, %v787_v44 }
  0xc4   : > { %v804_v25 = vpop.permute.xlu0 %803  ;;  %v814_v11 = vpop.permute.xlu1 %813 }
  0xc5   : > { %v952_v33 = vsel %vm950_vm10, %v935_v12, %v804_v25  ;;  %v962_v38 = vsel %vm950_vm10, %v945_v20, %v814_v11 }
  0xc8   : > { %v806_v29 = vpop.permute.xlu0 %805  ;;  %v831_v31 = vpop.permute.xlu1 %830 }
  0xc9   : > { %v977_v17 = vsel %vm967_vm11, %v960_v63, %v831_v31  ;;  %v954_v21 = vsel %vm950_vm10, %v937_v35, %v806_v29 }
  0xcc   : > { %v823_v8 = vpop.permute.xlu0 %822  ;;  %v833_v51 = vpop.permute.xlu1 %832 }
  0xcd   : > { %v969_v6 = vsel %vm967_vm11, %v952_v33, %v823_v8  ;;  %v979_v61 = vsel %vm967_vm11, %v962_v38, %v833_v51 }
  0xd0   : > { %v825_v23 = vpop.permute.xlu0 %824  ;;  %v850_v3 = vpop.permute.xlu1 %849 }
  0xd1   : > { %v994_v4 = vsel %vm984_vm12, %v977_v17, %v850_v3  ;;  %v971_v27 = vsel %vm967_vm11, %v954_v21, %v825_v23 }
  0xd2   : > { %1472 = vmatprep.mubr.msk.bf16.mxu1 %vm1044_vm13, %v994_v4 }
  0xd4   : > { %v842_v54 = vpop.permute.xlu0 %841  ;;  %v700_v30 = vpop.permute.xlu1 %699 }
  0xd5   : > { %v986_v22 = vsel %vm984_vm12, %v969_v6, %v842_v54  ;;  %v878_v8 = vsel %vm857_vm2, %v1620_v39, %v700_v30 }
  0xd6   : > { %1464 = vmatprep.mubr.msk.bf16.mxu0 %vm1044_vm13, %v986_v22 }
  0xd8   : > { %v692_v42 = vpop.permute.xlu0 %691  ;;  %v852_v15 = vpop.permute.xlu1 %851 }
  0xd9   : > { %v996_v59 = vsel %vm984_vm12, %v979_v61, %v852_v15  ;;  %v866_v1 = vsel %vm857_vm2, %v1637_v48, %v692_v42 }
  0xda   : > { %1473 = vmatmul.mubr.msk.bf16.vlgmr.msra.gmra.mxu1 %vm1044_vm13, %v996_v59 }
  0xdc   : > { %v844_v34 = vpop.permute.xlu0 %843  ;;  %v702_v7 = vpop.permute.xlu1 %701 }
  0xdd   : > { %v988_v41 = vsel %vm984_vm12, %v971_v27, %v844_v34  ;;  %v881_v63 = vsel %vm857_vm2, %v1856_v32, %v702_v7 }
  0xde   : > { %1465 = vmatmul.mubr.msk.bf16.vlgmr.msra.gmra.mxu0 %vm1044_vm13, %v988_v41  ;;  %v1345_v41 = vld [vmem:[%s2154_s2] ss:$0 sm:$0xff] }
  0xe0   : > { %v694_v37 = vpop.permute.xlu0 %693  ;;  %v740_v56 = vpop.permute.xlu1 %739 }
  0xe1   : > { %v896_v45 = vsel %vm882_vm5, %v878_v8, %v740_v56  ;;  %v869_v32 = vsel %vm857_vm2, %v1865_v18, %v694_v37 }
  0xe4   : > { %v732_v40 = vpop.permute.xlu0 %731  ;;  %v742_v43 = vpop.permute.xlu1 %741 }
  0xe5   : > { %v888_v23 = vsel %vm882_vm5, %v866_v1, %v732_v40  ;;  %v898_v39 = vsel %vm882_vm5, %v881_v63, %v742_v43 }
  0xe8   : > { %v734_v50 = vpop.permute.xlu0 %733  ;;  %v759_v19 = vpop.permute.xlu1 %758 }
  0xe9   : > { %v913_v49 = vsel %vm899_vm7, %v896_v45, %v759_v19  ;;  %v890_v10 = vsel %vm882_vm5, %v869_v32, %v734_v50 }
  0xec   : > { %v751_v36 = vpop.permute.xlu0 %750  ;;  %v761_v14 = vpop.permute.xlu1 %760 }
  0xed   : > { %v905_v17 = vsel %vm899_vm7, %v888_v23, %v751_v36  ;;  %v915_v52 = vsel %vm899_vm7, %v898_v39, %v761_v14 }
  0xf0   : > { %v753_v55 = vpop.permute.xlu0 %752  ;;  %v778_v53 = vpop.permute.xlu1 %777 }
  0xf1   : > { %v930_v9 = vsel %vm916_vm8, %v913_v49, %v778_v53  ;;  %v907_v30 = vsel %vm899_vm7, %v890_v10, %v753_v55 }
  0xf4   : > { %v770_v16 = vpop.permute.xlu0 %769  ;;  %v780_v44 = vpop.permute.xlu1 %779 }
  0xf5   : > { %v922_v48 = vsel %vm916_vm8, %v905_v17, %v770_v16  ;;  %v932_v33 = vsel %vm916_vm8, %v915_v52, %v780_v44 }
  0xf8   : > { %v772_v46 = vpop.permute.xlu0 %771  ;;  %v797_v25 = vpop.permute.xlu1 %796 }
  0xf9   : > { %v947_v0 = vsel %vm933_vm9, %v930_v9, %v797_v25  ;;  %v924_v28 = vsel %vm916_vm8, %v907_v30, %v772_v46 }
  0xfc   : > { %v789_v60 = vpop.permute.xlu0 %788  ;;  %v799_v11 = vpop.permute.xlu1 %798 }
  0xfd   : > { %v939_v6 = vsel %vm933_vm9, %v922_v48, %v789_v60  ;;  %v949_v13 = vsel %vm933_vm9, %v932_v33, %v799_v11 }
 0x100   : > { %v791_v58 = vpop.permute.xlu0 %790  ;;  %v816_v26 = vpop.permute.xlu1 %815 }
 0x101   : > { %v964_v3 = vsel %vm950_vm10, %v947_v0, %v816_v26  ;;  %v941_v61 = vsel %vm933_vm9, %v924_v28, %v791_v58 }
 0x104   : > { %v808_v29 = vpop.permute.xlu0 %807  ;;  %v818_v31 = vpop.permute.xlu1 %817 }
 0x105   : > { %v956_v22 = vsel %vm950_vm10, %v939_v6, %v808_v29  ;;  %v966_v57 = vsel %vm950_vm10, %v949_v13, %v818_v31 }
 0x108   : > { %v810_v47 = vpop.permute.xlu0 %809  ;;  %v835_v5 = vpop.permute.xlu1 %834 }
 0x109   : > { %v981_v12 = vsel %vm967_vm11, %v964_v3, %v835_v5  ;;  %v958_v35 = vsel %vm950_vm10, %v941_v61, %v810_v47 }
 0x10c   : > { %v827_v51 = vpop.permute.xlu0 %826  ;;  %v837_v62 = vpop.permute.xlu1 %836 }
 0x10d   : > { %v973_v18 = vsel %vm967_vm11, %v956_v22, %v827_v51  ;;  %v983_v38 = vsel %vm967_vm11, %v966_v57, %v837_v62 }
 0x110   : > { %v829_v2 = vpop.permute.xlu0 %828  ;;  %v854_v4 = vpop.permute.xlu1 %853 }
 0x111   : > { %v998_v54 = vsel %vm984_vm12, %v981_v12, %v854_v4  ;;  %v975_v59 = vsel %vm967_vm11, %v958_v35, %v829_v2 }
 0x112   : > { %1476 = vmatprep.mubr.msk.bf16.mxu1 %vm1044_vm13, %v998_v54 }
 0x114   : > { %v846_v20 = vpop.permute.xlu0 %845  ;;  %v856_v24 = vpop.permute.xlu1 %855 }
 0x115   : > { %v990_v42 = vsel %vm984_vm12, %v973_v18, %v846_v20  ;;  %v1000_v15 = vsel %vm984_vm12, %v983_v38, %v856_v24 }
 0x116   : > { %1468 = vmatprep.mubr.msk.bf16.mxu0 %vm1044_vm13, %v990_v42  ;;  %1477 = vmatmul.mubr.msk.bf16.gmra.mxu1 %vm1044_vm13, %v1000_v15 }
 0x118   : > { %v848_v21 = vpop.permute.xlu0 %847 }
 0x119   : > { %v992_v27 = vsel %vm984_vm12, %v975_v59, %v848_v21 }
 0x11a   : > { %1469 = vmatmul.mubr.msk.bf16.gmra.mxu0 %vm1044_vm13, %v992_v27 }
 0x19a   : > { %v1474_v34 = vpop.f32.mrf.mxu1 }
 0x19b   : > { %v1140_v40 = vadd.f32 %v1474_v34, %v1345_v41 }
 0x19c   : > { %v1131_v7 = vpop.f32.mrf.mxu1 }
 0x19d   : > { %v1132_v36 = vadd.f32 %v1345_v41, %v1131_v7 }
 0x19e   : > { %v1466_v37 = vpop.f32.mrf.mxu0  ;;  %v1475_v56 = vpop.f32.mrf.mxu1 }
 0x19f   : > { %v1143_v50 = vadd.f32 %v1475_v56, %v1345_v41  ;;  %v1108_v16 = vadd.f32 %v1466_v37, %v1345_v41 }
 0x1a0   : > { %v1099_v43 = vpop.f32.mrf.mxu0  ;;  %v1134_v19 = vpop.f32.mrf.mxu1 }
 0x1a1   : > { %v1422_v55 = vpack.c.bf16 %v1143_v50, %v1140_v40  ;;  %v1135_v53 = vadd.f32 %v1345_v41, %v1134_v19  ;;  %v1100_v60 = vadd.f32 %v1345_v41, %v1099_v43 }
 0x1a2   : > { %v1467_v14 = vpop.f32.mrf.mxu0 }
 0x1a3   : > { %v1111_v44 = vadd.f32 %v1467_v14, %v1345_v41  ;;  %1438 = vst [vmem:[%s2139_s16 + $0x28] sm:$0xff] %v1422_v55   ;;  %v1417_v25 = vpack.c.bf16 %v1135_v53, %v1132_v36 }
 0x1a4   : > { %v1102_v46 = vpop.f32.mrf.mxu0 }
 0x1a5   : > { %v1402_v11 = vpack.c.bf16 %v1111_v44, %v1108_v16  ;;  %v1103_v58 = vadd.f32 %v1345_v41, %v1102_v46  ;;  %1437 = vst [vmem:[%s2139_s16 + $0x20] sm:$0xff] %v1417_v25  }
 0x1a7   : > { %1434 = vst [vmem:[%s2139_s16 + $0x8] sm:$0xff] %v1402_v11   ;;  %v1397_v26 = vpack.c.bf16 %v1103_v58, %v1100_v60 }
 0x1a9   : > { %1398 = vst [vmem:[%s2139_s16] sm:$0xff] %v1397_v26  }
 0x1d6   : > { %v1478_v29 = vpop.f32.mrf.mxu1 }
 0x1d7   : > { %v1156_v8 = vadd.f32 %v1478_v29, %v1345_v41 }
 0x1d8   : > { %v1147_v31 = vpop.f32.mrf.mxu1 }
 0x1d9   : > { %v1148_v62 = vadd.f32 %v1345_v41, %v1147_v31 }
 0x1da   : > { %v1470_v47 = vpop.f32.mrf.mxu0  ;;  %v1479_v5 = vpop.f32.mrf.mxu1 }
 0x1db   : > { %v1159_v51 = vadd.f32 %v1479_v5, %v1345_v41  ;;  %v1124_v23 = vadd.f32 %v1470_v47, %v1345_v41 }
 0x1dc   : > { %v1115_v45 = vpop.f32.mrf.mxu0  ;;  %v1150_v49 = vpop.f32.mrf.mxu1 }
 0x1dd   : > { %v1432_v9 = vpack.c.bf16 %v1159_v51, %v1156_v8  ;;  %v1151_v63 = vadd.f32 %v1345_v41, %v1150_v49  ;;  %v1116_v3 = vadd.f32 %v1345_v41, %v1115_v45 }
 0x1de   : > { %v1471_v1 = vpop.f32.mrf.mxu0 }
 0x1df   : > { %v1127_v0 = vadd.f32 %v1471_v1, %v1345_v41  ;;  %1440 = vst [vmem:[%s2139_s16 + $0x38] sm:$0xff] %v1432_v9   ;;  %v1427_v17 = vpack.c.bf16 %v1151_v63, %v1148_v62 }
 0x1e0   : > { %v1118_v39 = vpop.f32.mrf.mxu0 }
 0x1e1   : > { %v1412_v2 = vpack.c.bf16 %v1127_v0, %v1124_v23  ;;  %v1119_v52 = vadd.f32 %v1345_v41, %v1118_v39  ;;  %1439 = vst [vmem:[%s2139_s16 + $0x30] sm:$0xff] %v1427_v17  }
 0x1e3   : > { %1436 = vst [vmem:[%s2139_s16 + $0x18] sm:$0xff] %v1412_v2   ;;  %v1407_v48 = vpack.c.bf16 %v1119_v52, %v1116_v3 }
 0x1e5   : > { %1435 = vst [vmem:[%s2139_s16 + $0x10] sm:$0xff] %v1407_v48  }
 0x1e6 PF: > { %s13_s12 = sadd.s32 1, %s1520_s12  }
 0x1e7   : > { %p10_p4 = scmp.ge.s32.totalorder %s13_s12, 6  }
 0x1e9   :  { %12 = sbr.rel (!%p10_p4) target bundleno = 1 (0x1), region = 62 }

</bundles_post_ra>
